<compile_context>
chip_gen: v6e
topology: v6e:2x2x1
jax: 0.10.0
libtpu: 0.0.40
codegen_flags: <defaults>
</compile_context>

<pallas_src>
import jax
import jax.numpy as jnp
from jax.experimental import pallas as pl
from jax.experimental.pallas import tpu as pltpu


def linear_sigmoid_kernel(w_ref, b_ref, xt_ref, o_ref):
    # w_ref: (2,) SMEM, b_ref: (1,) SMEM, xt_ref: (2, TB) VMEM, o_ref: (1, TB) VMEM.
    w0 = w_ref[0]
    w1 = w_ref[1]
    b = b_ref[0]

    x = xt_ref[...]                              # (2, TB) lane-dense tile
    # Two VPU FMAs with scalar broadcast; sublane slices, no lane masking.
    y = x[0:1, :] * w0 + x[1:2, :] * w1 + b      # (1, TB)

    # Exact sigmoid: exp goes to the EUP; the divide is exact (no approx
    # reciprocal) so results match the reference to float32 precision.
    o_ref[...] = 1.0 / (1.0 + jnp.exp(-y))


def main_brain_forward(x, weight, bias, *, tb=512):
    """sigmoid(x @ W^T + b) for W: (1, 2), b: (1,). Returns (B, 1) float32."""
    B = x.shape[0]

    # Lane-dense layout: features -> sublanes, batch -> lanes.
    xt = x.astype(jnp.float32).T                 # (2, B)
    n_tiles = pl.cdiv(B, tb)
    b_pad = n_tiles * tb
    if b_pad != B:
        xt = jnp.pad(xt, ((0, 0), (0, b_pad - B)))

    w1d = weight.reshape(2).astype(jnp.float32)  # 1-D SMEM (avoids 2-D padding)
    b1d = bias.reshape(1).astype(jnp.float32)

    out_t = pl.pallas_call(
        linear_sigmoid_kernel,
        out_shape=jax.ShapeDtypeStruct((1, b_pad), jnp.float32),
        grid=(n_tiles,),
        in_specs=[
            pl.BlockSpec(memory_space=pltpu.MemorySpace.SMEM),   # weight (2,)
            pl.BlockSpec(memory_space=pltpu.MemorySpace.SMEM),   # bias   (1,)
            pl.BlockSpec((2, tb), lambda i: (0, i)),             # x^T tile
        ],
        out_specs=pl.BlockSpec((1, tb), lambda i: (0, i)),
        compiler_params=pltpu.CompilerParams(
            dimension_semantics=("parallel",),                   # v7x dual-TC
        ),
    )(w1d, b1d, xt)

    return out_t[0, :B].reshape(B, 1)


if __name__ == "__main__":
    key = jax.random.PRNGKey(0)
    kx, kw, kb = jax.random.split(key, 3)

    B = 8  # small batch consistent with Linear(2, 1)
    x = jax.random.normal(kx, (B, 2), dtype=jnp.float32)

    # Deterministic init mimicking torch.nn.Linear(2, 1): U(-1/sqrt(2), 1/sqrt(2))
    bound = 1.0 / jnp.sqrt(2.0)
    weight = jax.random.uniform(kw, (1, 2), minval=-bound, maxval=bound,
                                dtype=jnp.float32)
    bias = jax.random.uniform(kb, (1,), minval=-bound, maxval=bound,
                              dtype=jnp.float32)

    out = main_brain_forward(x, weight, bias)
    out = jax.block_until_ready(out)

    # Reference in plain JAX (matches torch.sigmoid(Linear(x)))
    z = x @ weight.T + bias
    ref = 1.0 / (1.0 + jnp.exp(-z))
    assert out.shape == (B, 1)
    assert jnp.allclose(out, ref, atol=1e-5, rtol=1e-5), (
        f"max abs err {jnp.max(jnp.abs(out - ref))}")

    print("KERNEL_OK")
</pallas_src>

<mosaic_0001>
module attributes {stable_mosaic.version = 11 : i64} {
  func.func @linear_sigmoid_kernel(%arg0: i32, %arg1: memref<2xf32, #tpu.memory_space<smem>>, %arg2: memref<1xf32, #tpu.memory_space<smem>>, %arg3: memref<2x512xf32, #tpu.memory_space<vmem>>, %arg4: memref<1x512xf32, #tpu.memory_space<vmem>>) attributes {dimension_semantics = [#tpu.dimension_semantics<parallel>], iteration_bounds = array<i64: 1>, scalar_prefetch = 0 : i64, scratch_operands = 0 : i64, tpu.core_type = #tpu.core_type<tc>, window_params = [{transform_indices = @transform_0, window_bounds = array<i64: 2>}, {transform_indices = @transform_1, window_bounds = array<i64: 1>}, {transform_indices = @transform_2, window_bounds = array<i64: 2, 512>}, {transform_indices = @transform_3, window_bounds = array<i64: 1, 512>}]} {
    %c0 = arith.constant 0 : index
    %0 = memref.load %arg1[%c0] : memref<2xf32, #tpu.memory_space<smem>>
    %c1 = arith.constant 1 : index
    %1 = memref.load %arg1[%c1] : memref<2xf32, #tpu.memory_space<smem>>
    %c0_0 = arith.constant 0 : index
    %2 = memref.load %arg2[%c0_0] : memref<1xf32, #tpu.memory_space<smem>>
    %c0_1 = arith.constant 0 : index
    %c0_2 = arith.constant 0 : index
    %3 = vector.load %arg3[%c0_1, %c0_2] : memref<2x512xf32, #tpu.memory_space<vmem>>, vector<2x512xf32>
    %4 = vector.extract_strided_slice %3 {offsets = [0, 0], sizes = [1, 512], strides = [1, 1]} : vector<2x512xf32> to vector<1x512xf32>
    %5 = vector.broadcast %0 : f32 to vector<1x512xf32>
    %6 = arith.mulf %4, %5 : vector<1x512xf32>
    %7 = vector.extract_strided_slice %3 {offsets = [1, 0], sizes = [1, 512], strides = [1, 1]} : vector<2x512xf32> to vector<1x512xf32>
    %8 = vector.broadcast %1 : f32 to vector<1x512xf32>
    %9 = arith.mulf %7, %8 : vector<1x512xf32>
    %10 = arith.addf %6, %9 : vector<1x512xf32>
    %11 = vector.broadcast %2 : f32 to vector<1x512xf32>
    %12 = arith.addf %10, %11 : vector<1x512xf32>
    %cst = arith.constant 0.000000e+00 : f32
    %13 = vector.broadcast %cst : f32 to vector<1x512xf32>
    %14 = arith.subf %13, %12 : vector<1x512xf32>
    %15 = math.exp %14 : vector<1x512xf32>
    %cst_3 = arith.constant 1.000000e+00 : f32
    %16 = vector.broadcast %cst_3 : f32 to vector<1x512xf32>
    %17 = arith.addf %16, %15 : vector<1x512xf32>
    %cst_4 = arith.constant 1.000000e+00 : f32
    %18 = vector.broadcast %cst_4 : f32 to vector<1x512xf32>
    %19 = arith.divf %18, %17 : vector<1x512xf32>
    %c0_5 = arith.constant 0 : index
    %c0_6 = arith.constant 0 : index
    %20 = vector.load %arg4[%c0_5, %c0_6] : memref<1x512xf32, #tpu.memory_space<vmem>>, vector<1x512xf32>
    tpu.vector_store %arg4[%c0_5, %c0_6], %19 {strides = array<i32>} : memref<1x512xf32, #tpu.memory_space<vmem>>, vector<1x512xf32>,
    return
  }
  func.func @transform_0(%arg0: i32) -> i32 {
    %c0_i32 = arith.constant 0 : i32
    %c0_i32_0 = arith.constant 0 : i32
    return %c0_i32 : i32
  }
  func.func @transform_1(%arg0: i32) -> i32 {
    %c0_i32 = arith.constant 0 : i32
    %c0_i32_0 = arith.constant 0 : i32
    return %c0_i32 : i32
  }
  func.func @transform_2(%arg0: i32) -> (i32, i32) {
    %c0_i32 = arith.constant 0 : i32
    %c0_i32_0 = arith.constant 0 : i32
    return %c0_i32, %arg0 : i32, i32
  }
  func.func @transform_3(%arg0: i32) -> (i32, i32) {
    %c0_i32 = arith.constant 0 : i32
    %c0_i32_0 = arith.constant 0 : i32
    return %c0_i32, %arg0 : i32, i32
  }
}

</mosaic_0001>

<bundles_post_ra>
// kernel: tpu_custom_call.1
= control target key start
LH: loop header
LB: loop body
LE: loop exit
PB: predicated region body
PF: predicated region fallthrough
CT: control target
= control target key end

     0   :  { %9 = vsyncpa [#allocation6], 0  ;;  %s196_s0 = inlined_call_operand.vmem [shape: f32[2], index: 0, kind: input, shape index: {}]   ;;  %s197_s1 = inlined_call_operand.<no memory space> [shape: f32[1], index: 1, kind: input, shape index: {}]   ;;  %s198_s2 = inlined_call_operand.hbm [shape: f32[2,512], index: 2, kind: input, shape index: {}]   ;;  %s199_s3 = inlined_call_operand.hbm [shape: f32[1,512], index: 3, kind: output, shape index: {}]  }
   0x1   :  { %10 = vsyncpa [#allocation4], 0 }
   0x2   :  { %11 = vsyncpa [#allocation5], 0  ;;  %s18_s14 = sshll.u32 %s196_s0, 4  ;;  %s19_s14 = int_to_ptr.vmem [resolvable:$true] %s18_s14 }
   0x3   :  { %s102_s15 = scalar_lea.vmem %s19_s14, 16  ;;  %p107_p1 = scmp.lt.s32.totalorder %s19_s14, %s19_s14 }
   0x4   :  { %p103_p0 = scmp.ne.s32.totalorder %s19_s14, %s102_s15  ;;  %p108_p2 = scmp.lt.s32.totalorder %s102_s15, %s102_s15 }
   0x6   :  { %p109_p3 = por %p108_p2, %p107_p1 }
   0x8   :  { %p110_p4 = pnand %p109_p3, %p103_p0 }
   0xa   :  { %113 = shalt.err (!%p110_p4)
}
   0xb   :  { %s160_s16 = smov [#allocation3]   ;;  %s161_s17 = smov [#allocation7]  }
   0xc   :  { %21 = dma.vmem_to_smem %s19_s14, 16, %s160_s16, [#allocation6]  }
   0xd   :  { %s30_s18 = sshll.u32 %s161_s17, 4  ;;  %s31_s18 = int_to_ptr.vmem [resolvable:$true] %s30_s18 }
   0xe   :  { %s122_s19 = scalar_lea.vmem %s31_s18, 128  ;;  %p127_p6 = scmp.lt.s32.totalorder %s31_s18, %s31_s18 }
   0xf   :  { %p123_p5 = scmp.ne.s32.totalorder %s31_s18, %s122_s19  ;;  %p128_p7 = scmp.lt.s32.totalorder %s122_s19, %s122_s19 }
  0x11   :  { %p129_p8 = por %p128_p7, %p127_p6 }
  0x13   :  { %p130_p9 = pnand %p129_p8, %p123_p5 }
  0x15   :  { %133 = shalt.err (!%p130_p9)
}
  0x16   :  { %33 = dma.hbm_to_vmem [thread:$0]  %s198_s2, 128, %s31_s18, [#allocation4]  }
  0x17   :  { %154 = dma.done.wait [#allocation6], 16  }
  0x18   :  { %155 = vsyncadd [#allocation6], 4294967280 }
  0x19   :  { %156 = dma.done.wait [#allocation4], 128  }
  0x1a   :  { %157 = vsyncadd [#allocation4], 4294967168 }
  0x1b   :  { %40 = sfence }
  0x1c   :  { %s41_s21 = sld [smem:[#allocation3]]  ;;  %v44_v0 = vld [vmem:[#allocation7] sm:$0xff]  ;;  %v54_v6 = vstv %s197_s1  ;;  %v162_v13 = vmov 1966171168   ;;  %v66_v15 = vlaneseq  ;;  %s163_s2 = smov [#allocation8]  }
  0x1d   :  { %s92_s22 = sld [smem:[#allocation3 + $0x1]]  ;;  %v64_v14 = vunpack.c.l.s4 %v162_v13  ;;  %s82_s25 = sshll.u32 %s163_s2, 4  ;;  %s83_s25 = int_to_ptr.vmem [resolvable:$true] %s82_s25 }
  0x1e   :  { %v67_v17 = vshrl.u32 %v66_v15, 7  ;;  %vm73_vm0 = vcmp.lt.s32.totalorder %v66_v15, 512  ;;  %s134_s1 = scalar_lea.vmem %s83_s25, 64  ;;  %p139_p11 = scmp.lt.s32.totalorder %s83_s25, %s83_s25 }
  0x1f   :  { %v65_v16 = vunpack.c.0.s8 %v64_v14  ;;  %p135_p10 = scmp.ne.s32.totalorder %s83_s25, %s134_s1  ;;  %p140_p12 = scmp.lt.s32.totalorder %s134_s1, %s134_s1 }
  0x21   :  { %v68_v18 = vsub.s32 %v65_v16, %v67_v17  ;;  %p141_p13 = por %p140_p12, %p139_p11 }
  0x22   :  { %v45_v1 = vstv %s41_s21 }
  0x23   :  { %v47_v2 = vstv %s92_s22  ;;  %v46_v3 = vmul.f32 %v45_v1, %v44_v0  ;;  %p142_p0 = pnand %p141_p13, %p135_p10 }
  0x24   :  { %v48_v4 = vmul.f32 %v47_v2, %v44_v0 }
  0x26   :  { %v93_v5 = vrot.slane %v48_v4, 9 }
  0x28   :  { %v53_v7 = vadd.f32 %v93_v5, %v46_v3 }
  0x2a   :  { %v55_v8 = vadd.f32 %v54_v6, %v53_v7 }
  0x2c   :  { %v56_v9 = vsub.f32 0.0, %v55_v8 }
  0x2e   :  { %v57_v10 = vmul.f32 1.442695, %v56_v9 }
  0x30   :  { %98 = vpow2.f32 %v57_v10 }
  0x3d   :  { %v99_v11 = vpop.eup %98 }
  0x3e   :  { %v59_v12 = vadd.f32 1.0, %v99_v11 }
  0x40   :  { %100 = vrcp.f32 %v59_v12 }
  0x4d   :  { %v101_v19 = vpop.eup %100 }
  0x4e   :  { %v69_v20 = vrot.slane %v101_v19, %v68_v18 }
  0x50   :  { %75 = vst.msk [vmem:[#allocation8] sm:$0xf] %vm73_vm0, %v69_v20 }
  0x51   :  { %145 = shalt.err (!%p142_p0)
}
  0x52   :  { %85 = dma.vmem_to_hbm [thread:$0]  %s83_s25, 64, %s199_s3, [#allocation5]  }
  0x53   :  { %158 = dma.done.wait [#allocation5], 64  }
  0x54   :  { %159 = vsyncadd [#allocation5], 4294967232 }
  0x55   :  { %89 = vsyncpa [#allocation4], 1 }
  0x56   :  { %90 = vsyncpa [#allocation5], 1 }
  0x57   :  { %91 = vsyncpa [#allocation6], 1 }

</bundles_post_ra>
